<compile_context>
chip_gen: v7x
topology: tpu7x:2x2x1
jax: 0.10.0
libtpu: 0.0.40
codegen_flags: <defaults>
</compile_context>

<pallas_src>
import functools

import jax
import jax.numpy as jnp
from jax.experimental import pallas as pl
from jax.experimental.pallas import tpu as pltpu

_LANE = 128
_SUBLANE = 8
_BN_EPS = 1e-5


def _round_up(x, m):
    return ((x + m - 1) // m) * m


# ---------------------------------------------------------------------------
# Pallas kernel: one batch tile, all filter branches fused
# ---------------------------------------------------------------------------
def _fused_cnn_kernel(x_ref, w_ref, max_ref, stats_ref=None, *,
                      n_tile, h_out, f_span, use_batchnorm):
    """One tile of `n_tile` samples.

    x_ref:     (H_pad, n_tile, E)  bf16  zero-padded input (seq-major layout)
    w_ref:     (f_span, E, C_pad)  bf16  fused per-offset conv weights
    max_ref:   (n_tile, C_pad)     f32   per-sample max over H (post activation)
    stats_ref: (1, 2, C_pad)       f32   per-tile [sum, sumsq] of relu(conv)
                                         (only present on the BatchNorm path)
    """
    x = x_ref[...]                               # (H_pad, n_tile, E) bf16
    w = w_ref[...]                               # (f_span, E, C_pad) bf16
    e = x.shape[-1]
    c_pad = w.shape[-1]
    rows = h_out * n_tile

    # Conv2d(kernel=(f, E), padding=(f//2, 0), bias=False), all filters at once:
    #   conv[h, n, c] = sum_k  x_padded[h + k, n, :] @ W[k][:, c]
    # f_span shifted (rows, E) @ (E, C_pad) MXU matmuls, shared f32 accumulator.
    acc = jnp.zeros((rows, c_pad), jnp.float32)
    for k in range(f_span):                      # static unroll, f_span is small
        xk = x[k:k + h_out].reshape(rows, e)     # leading-axis slice -> clean reshape
        acc = acc + jnp.dot(xk, w[k], preferred_element_type=jnp.float32)

    if use_batchnorm:
        # PyTorch `if self.use_batchnorm:` branch => tanh, NO BatchNorm.
        # tanh is monotone increasing, so tanh(max_h conv) == max_h tanh(conv):
        # take the (cheap) max over H first and do only n_tile*C tanh's on the EUP.
        conv3 = acc.reshape(h_out, n_tile, c_pad)
        max_ref[...] = jnp.tanh(jnp.max(conv3, axis=0))
    else:
        # PyTorch `else:` branch => relu + BatchNorm2d (training-mode batch stats,
        # gamma=1, beta=0, biased variance, eps=1e-5).  The per-channel affine has
        # a positive scale, so it commutes with the max over H: emit raw per-sample
        # maxima plus per-channel sum/sumsq partials; the wrapper applies the
        # global-batch normalisation on the tiny (N, C) result.
        act = jnp.maximum(acc, 0.0)
        max_ref[...] = jnp.max(act.reshape(h_out, n_tile, c_pad), axis=0)
        s = jnp.sum(act, axis=0, keepdims=True)                  # (1, C_pad)
        ss = jnp.sum(act * act, axis=0, keepdims=True)           # (1, C_pad)
        stats_ref[...] = jnp.concatenate([s, ss], axis=0).reshape(1, 2, c_pad)


def _run_fused(x_pad, w_fused, *, n_tile, h_out, use_batchnorm):
    """x_pad: (H_pad, N_pad, E) bf16; w_fused: (f_span, E, C_pad) bf16."""
    h_pad, n_pad, e = x_pad.shape
    f_span, _, c_pad = w_fused.shape
    num_tiles = n_pad // n_tile

    kernel = functools.partial(
        _fused_cnn_kernel, n_tile=n_tile, h_out=h_out, f_span=f_span,
        use_batchnorm=use_batchnorm)

    in_specs = [
        # Batch-tiled input block streams (pipelined) across the grid.
        pl.BlockSpec((h_pad, n_tile, e), lambda i: (0, i, 0)),
        # Constant index_map => weights loaded once and stay VMEM-resident.
        pl.BlockSpec((f_span, e, c_pad), lambda i: (0, 0, 0)),
    ]
    if use_batchnorm:
        out_shape = jax.ShapeDtypeStruct((n_pad, c_pad), jnp.float32)
        out_specs = pl.BlockSpec((n_tile, c_pad), lambda i: (i, 0))
        out_bytes = n_pad * c_pad * 4
        transcendentals = n_pad * c_pad
    else:
        out_shape = (jax.ShapeDtypeStruct((n_pad, c_pad), jnp.float32),
                     jax.ShapeDtypeStruct((num_tiles, 2, c_pad), jnp.float32))
        out_specs = (pl.BlockSpec((n_tile, c_pad), lambda i: (i, 0)),
                     pl.BlockSpec((1, 2, c_pad), lambda i: (i, 0, 0)))
        out_bytes = (n_pad * c_pad + num_tiles * 2 * c_pad) * 4
        transcendentals = 0

    cost = pl.CostEstimate(
        flops=2 * n_pad * h_out * e * c_pad * f_span,
        transcendentals=transcendentals,
        bytes_accessed=x_pad.size * 2 + w_fused.size * 2 + out_bytes)

    return pl.pallas_call(
        kernel,
        grid=(num_tiles,),
        in_specs=in_specs,
        out_specs=out_specs,
        out_shape=out_shape,
        compiler_params=pltpu.CompilerParams(
            dimension_semantics=("parallel",)),   # v7x: shard batch over 2 TCs
        cost_estimate=cost,
    )(x_pad, w_fused)


# ---------------------------------------------------------------------------
# Jitted forward: layout prep (pad / transpose / bf16 cast fuse in XLA),
# fused Pallas kernel, tiny plain-JAX BatchNorm finalize.
# ---------------------------------------------------------------------------
@functools.partial(jax.jit, static_argnames=("c_total", "use_batchnorm"))
def _cnn_layer_forward(x_nchw, w_fused, *, c_total, use_batchnorm):
    assert x_nchw.shape[1] == 1, "CNNLayer uses in_channels=1"
    n, _, h, e = x_nchw.shape
    f_span, e_w, c_pad = w_fused.shape
    assert e == e_w, "embed_size mismatch"
    h_out = h                       # odd filters + padding=f//2 => same length

    # Batch tile: ~<=1024 activation rows per grid step, multiple of 8 samples
    # (output sublane alignment).  Keeps (rows x C_pad) f32 accumulator + two
    # double-buffered bf16 input blocks far below v7x's 32 MiB scoped VMEM.
    # TODO(synk): very long sequences (h_out >> 4096) would additionally need an
    # H-tiled reduction axis; not needed at these shapes.
    n_tile = max(_SUBLANE, (max(1, 1024 // h_out) // _SUBLANE) * _SUBLANE)
    n_tile = min(n_tile, _round_up(n, _SUBLANE))
    n_pad = _round_up(n, n_tile)
    pad_h = f_span // 2

    x = jnp.squeeze(x_nchw, axis=1)                        # (N, H, E)
    x = jnp.transpose(x, (1, 0, 2))                        # (H, N, E) seq-major
    x = jnp.pad(x, ((pad_h, pad_h), (0, n_pad - n), (0, 0)))
    x = x.astype(jnp.bfloat16)                             # (H_pad, N_pad, E)

    outs = _run_fused(x, w_fused, n_tile=n_tile, h_out=h_out,
                      use_batchnorm=use_batchnorm)

    if use_batchnorm:
        return outs[:n, :c_total]                          # tanh already applied

    maxes, stats = outs
    # Global (whole-batch) BatchNorm statistics.  Zero-padded samples / channels
    # contribute exactly 0 to sum and sumsq, so dividing by the true element
    # count N*H_out is exact.
    total = jnp.sum(stats, axis=0)                         # (2, C_pad)
    cnt = jnp.float32(n * h_out)
    mean = total[0] / cnt
    var = jnp.maximum(total[1] / cnt - mean * mean, 0.0)   # biased variance
    inv = jax.lax.rsqrt(var + _BN_EPS)
    out = (maxes - mean[None, :]) * inv[None, :]
    return out[:n, :c_total]


# ---------------------------------------------------------------------------
# Wrapper module (parameter init + fused-weight precompute)
# ---------------------------------------------------------------------------
class CNNLayerPallas:
    def __init__(self, filter_size, embed_size=32, use_batchnorm=False,
                 out_channels=32, dropout=0.2, *, key):
        self.filter_size = tuple(int(f) for f in filter_size)
        # TODO(synk): even filter sizes give a different conv output length per
        # branch; the fused single-matmul path assumes odd ("same"-length) filters.
        assert all(f % 2 == 1 for f in self.filter_size), \
            "fused Pallas path assumes odd filter sizes"
        self.embed_size = embed_size
        self.use_batchnorm = use_batchnorm
        self.out_channels = out_channels
        self.dropout = dropout

        # Deterministic synthetic weights, PyTorch Conv2d layout (C_out, 1, f, E).
        keys = jax.random.split(key, len(self.filter_size))
        self.weights = [
            0.1 * jax.random.normal(k, (out_channels, 1, f, embed_size),
                                    dtype=jnp.float32)
            for k, f in zip(keys, self.filter_size)
        ]

        # Precompute (once, not per call) the fused, lane-padded, bf16 weights:
        #   W_fused[k, e, j*C + c] = w_j[c, 0, k - d_j, e],  d_j = (f_max - f_j)//2
        self.f_span = max(self.filter_size)
        self.c_total = out_channels * len(self.filter_size)
        self.c_pad = _round_up(self.c_total, _LANE)
        w_fused = jnp.zeros((self.f_span, embed_size, self.c_pad), jnp.float32)
        for j, (w, f) in enumerate(zip(self.weights, self.filter_size)):
            d = self.f_span // 2 - f // 2
            wj = jnp.transpose(w[:, 0, :, :], (1, 2, 0))       # (f, E, C)
            w_fused = w_fused.at[
                d:d + f, :, j * out_channels:(j + 1) * out_channels].set(wj)
        self.w_fused = w_fused.astype(jnp.bfloat16)

    def __call__(self, x_nchw):
        out = _cnn_layer_forward(x_nchw.astype(jnp.float32), self.w_fused,
                                 c_total=self.c_total,
                                 use_batchnorm=self.use_batchnorm)
        # TODO(synk): nn.Dropout is applied as eval-mode identity (training-mode
        # random masking is not part of the deterministic math here).
        return out


# ---------------------------------------------------------------------------
# Pure-JAX reference of the PyTorch forward (same bf16 input rounding)
# ---------------------------------------------------------------------------
def _reference_forward(x_nchw, weights, filter_size, use_batchnorm):
    xq = x_nchw.astype(jnp.bfloat16).astype(jnp.float32)
    maxes = []
    for w, f in zip(weights, filter_size):
        wq = w.astype(jnp.bfloat16).astype(jnp.float32)
        conv = jax.lax.conv_general_dilated(
            xq, wq, window_strides=(1, 1),
            padding=((f // 2, f // 2), (0, 0)),
            dimension_numbers=("NCHW", "OIHW", "NCHW"),
            precision=jax.lax.Precision.HIGHEST)               # (N, C, H_out, 1)
        if use_batchnorm:
            pool = jnp.tanh(conv)
        else:
            pool = jnp.maximum(conv, 0.0)
            mean = jnp.mean(pool, axis=(0, 2, 3), keepdims=True)
            var = jnp.mean(jnp.square(pool - mean), axis=(0, 2, 3), keepdims=True)
            pool = (pool - mean) / jnp.sqrt(var + _BN_EPS)
        pool = jnp.mean(pool, axis=-1)                         # (N, C, H_out)
        maxes.append(jnp.max(pool, axis=-1))                   # (N, C)
    return jnp.concatenate(maxes, axis=1)


if __name__ == "__main__":
    # Small deterministic example consistent with the module:
    # batch=2, in_channels=1, seq_len=16, embed_size=32, out_channels=32,
    # filter_size=(3, 5)  =>  output (2, 64).
    key = jax.random.PRNGKey(0)
    k_x, k_w = jax.random.split(key)

    N, H, E, C = 2, 16, 32, 32
    filter_size = (3, 5)
    x = jax.random.normal(k_x, (N, 1, H, E), dtype=jnp.float32)

    for use_bn in (False, True):          # exercise both forward branches
        layer = CNNLayerPallas(filter_size, embed_size=E, use_batchnorm=use_bn,
                               out_channels=C, key=k_w)
        out = jax.block_until_ready(layer(x))
        assert out.shape == (N, C * len(filter_size)), out.shape

        ref = jax.block_until_ready(
            _reference_forward(x, layer.weights, filter_size, use_batchnorm=use_bn))
        err = float(jnp.max(jnp.abs(out - ref)))
        assert err < 1e-2, f"use_batchnorm={use_bn}: max abs err {err}"

    print("KERNEL_OK")
</pallas_src>

<mosaic_0001>
module attributes {stable_mosaic.version = 11 : i64} {
  func.func @_fused_cnn_kernel(%arg0: i32, %arg1: memref<20x8x32xbf16, #tpu.memory_space<vmem>>, %arg2: memref<5x32x128xbf16, #tpu.memory_space<vmem>>, %arg3: memref<8x128xf32, #tpu.memory_space<vmem>>, %arg4: memref<1x2x128xf32, #tpu.memory_space<vmem>>) attributes {dimension_semantics = [#tpu.dimension_semantics<parallel>], iteration_bounds = array<i64: 1>, scalar_prefetch = 0 : i64, scratch_operands = 0 : i64, tpu.core_type = #tpu.core_type<tc>, window_params = [{transform_indices = @transform_0, window_bounds = array<i64: 20, 8, 32>}, {pipeline_mode = #tpu.pipeline_mode<synchronous>, transform_indices = @transform_1, window_bounds = array<i64: 5, 32, 128>}, {transform_indices = @transform_2, window_bounds = array<i64: 8, 128>}, {transform_indices = @transform_3, window_bounds = array<i64: 1, 2, 128>}]} {
    %c0 = arith.constant 0 : index
    %c0_0 = arith.constant 0 : index
    %c0_1 = arith.constant 0 : index
    %0 = vector.load %arg1[%c0, %c0_0, %c0_1] : memref<20x8x32xbf16, #tpu.memory_space<vmem>>, vector<20x8x32xbf16>
    %c0_2 = arith.constant 0 : index
    %c0_3 = arith.constant 0 : index
    %c0_4 = arith.constant 0 : index
    %1 = vector.load %arg2[%c0_2, %c0_3, %c0_4] : memref<5x32x128xbf16, #tpu.memory_space<vmem>>, vector<5x32x128xbf16>
    %cst = arith.constant 0.000000e+00 : f32
    %2 = vector.broadcast %cst : f32 to vector<128x128xf32>
    %3 = vector.extract_strided_slice %0 {offsets = [0, 0, 0], sizes = [16, 8, 32], strides = [1, 1, 1]} : vector<20x8x32xbf16> to vector<16x8x32xbf16>
    %4 = vector.shape_cast %3 : vector<16x8x32xbf16> to vector<128x32xbf16>
    %5 = vector.extract_strided_slice %1 {offsets = [0, 0, 0], sizes = [1, 32, 128], strides = [1, 1, 1]} : vector<5x32x128xbf16> to vector<1x32x128xbf16>
    %6 = vector.shape_cast %5 : vector<1x32x128xbf16> to vector<32x128xbf16>
    %cst_5 = arith.constant dense<0.000000e+00> : vector<128x128xf32>
    %7 = tpu.matmul %4, %6, %cst_5 {dimension_numbers = #tpu.dot_dimension_numbers<[1], [0], [0], [1], [0, 0, 1, 1], [], []>} : vector<128x32xbf16>, vector<32x128xbf16>, vector<128x128xf32> -> vector<128x128xf32>
    %8 = arith.addf %2, %7 : vector<128x128xf32>
    %9 = vector.extract_strided_slice %0 {offsets = [1, 0, 0], sizes = [16, 8, 32], strides = [1, 1, 1]} : vector<20x8x32xbf16> to vector<16x8x32xbf16>
    %10 = vector.shape_cast %9 : vector<16x8x32xbf16> to vector<128x32xbf16>
    %11 = vector.extract_strided_slice %1 {offsets = [1, 0, 0], sizes = [1, 32, 128], strides = [1, 1, 1]} : vector<5x32x128xbf16> to vector<1x32x128xbf16>
    %12 = vector.shape_cast %11 : vector<1x32x128xbf16> to vector<32x128xbf16>
    %cst_6 = arith.constant dense<0.000000e+00> : vector<128x128xf32>
    %13 = tpu.matmul %10, %12, %cst_6 {dimension_numbers = #tpu.dot_dimension_numbers<[1], [0], [0], [1], [0, 0, 1, 1], [], []>} : vector<128x32xbf16>, vector<32x128xbf16>, vector<128x128xf32> -> vector<128x128xf32>
    %14 = arith.addf %8, %13 : vector<128x128xf32>
    %15 = vector.extract_strided_slice %0 {offsets = [2, 0, 0], sizes = [16, 8, 32], strides = [1, 1, 1]} : vector<20x8x32xbf16> to vector<16x8x32xbf16>
    %16 = vector.shape_cast %15 : vector<16x8x32xbf16> to vector<128x32xbf16>
    %17 = vector.extract_strided_slice %1 {offsets = [2, 0, 0], sizes = [1, 32, 128], strides = [1, 1, 1]} : vector<5x32x128xbf16> to vector<1x32x128xbf16>
    %18 = vector.shape_cast %17 : vector<1x32x128xbf16> to vector<32x128xbf16>
    %cst_7 = arith.constant dense<0.000000e+00> : vector<128x128xf32>
    %19 = tpu.matmul %16, %18, %cst_7 {dimension_numbers = #tpu.dot_dimension_numbers<[1], [0], [0], [1], [0, 0, 1, 1], [], []>} : vector<128x32xbf16>, vector<32x128xbf16>, vector<128x128xf32> -> vector<128x128xf32>
    %20 = arith.addf %14, %19 : vector<128x128xf32>
    %21 = vector.extract_strided_slice %0 {offsets = [3, 0, 0], sizes = [16, 8, 32], strides = [1, 1, 1]} : vector<20x8x32xbf16> to vector<16x8x32xbf16>
    %22 = vector.shape_cast %21 : vector<16x8x32xbf16> to vector<128x32xbf16>
    %23 = vector.extract_strided_slice %1 {offsets = [3, 0, 0], sizes = [1, 32, 128], strides = [1, 1, 1]} : vector<5x32x128xbf16> to vector<1x32x128xbf16>
    %24 = vector.shape_cast %23 : vector<1x32x128xbf16> to vector<32x128xbf16>
    %cst_8 = arith.constant dense<0.000000e+00> : vector<128x128xf32>
    %25 = tpu.matmul %22, %24, %cst_8 {dimension_numbers = #tpu.dot_dimension_numbers<[1], [0], [0], [1], [0, 0, 1, 1], [], []>} : vector<128x32xbf16>, vector<32x128xbf16>, vector<128x128xf32> -> vector<128x128xf32>
    %26 = arith.addf %20, %25 : vector<128x128xf32>
    %27 = vector.extract_strided_slice %0 {offsets = [4, 0, 0], sizes = [16, 8, 32], strides = [1, 1, 1]} : vector<20x8x32xbf16> to vector<16x8x32xbf16>
    %28 = vector.shape_cast %27 : vector<16x8x32xbf16> to vector<128x32xbf16>
    %29 = vector.extract_strided_slice %1 {offsets = [4, 0, 0], sizes = [1, 32, 128], strides = [1, 1, 1]} : vector<5x32x128xbf16> to vector<1x32x128xbf16>
    %30 = vector.shape_cast %29 : vector<1x32x128xbf16> to vector<32x128xbf16>
    %cst_9 = arith.constant dense<0.000000e+00> : vector<128x128xf32>
    %31 = tpu.matmul %28, %30, %cst_9 {dimension_numbers = #tpu.dot_dimension_numbers<[1], [0], [0], [1], [0, 0, 1, 1], [], []>} : vector<128x32xbf16>, vector<32x128xbf16>, vector<128x128xf32> -> vector<128x128xf32>
    %32 = arith.addf %26, %31 : vector<128x128xf32>
    %cst_10 = arith.constant 0.000000e+00 : f32
    %33 = vector.broadcast %cst_10 : f32 to vector<128x128xf32>
    %34 = arith.maximumf %32, %33 : vector<128x128xf32>
    %35 = vector.shape_cast %34 : vector<128x128xf32> to vector<16x8x128xf32>
    %cst_11 = arith.constant dense<0xFF800000> : vector<8x128xf32>
    %36 = vector.multi_reduction <maximumf>, %35, %cst_11 [0] : vector<16x8x128xf32> to vector<8x128xf32>
    %c0_12 = arith.constant 0 : index
    %c0_13 = arith.constant 0 : index
    %37 = vector.load %arg3[%c0_12, %c0_13] : memref<8x128xf32, #tpu.memory_space<vmem>>, vector<8x128xf32>
    tpu.vector_store %arg3[%c0_12, %c0_13], %36 {strides = array<i32>} : memref<8x128xf32, #tpu.memory_space<vmem>>, vector<8x128xf32>,
    %cst_14 = arith.constant dense<0.000000e+00> : vector<128xf32>
    %38 = vector.multi_reduction <add>, %34, %cst_14 [0] : vector<128x128xf32> to vector<128xf32>
    %39 = vector.shape_cast %38 : vector<128xf32> to vector<1x128xf32>
    %40 = arith.mulf %34, %34 : vector<128x128xf32>
    %cst_15 = arith.constant dense<0.000000e+00> : vector<128xf32>
    %41 = vector.multi_reduction <add>, %40, %cst_15 [0] : vector<128x128xf32> to vector<128xf32>
    %42 = vector.shape_cast %41 : vector<128xf32> to vector<1x128xf32>
    %43 = tpu.concatenate %39, %42 in 0 : vector<1x128xf32>, vector<1x128xf32> -> vector<2x128xf32>
    %44 = vector.shape_cast %43 : vector<2x128xf32> to vector<1x2x128xf32>
    %c0_16 = arith.constant 0 : index
    %c0_17 = arith.constant 0 : index
    %c0_18 = arith.constant 0 : index
    %45 = vector.load %arg4[%c0_16, %c0_17, %c0_18] : memref<1x2x128xf32, #tpu.memory_space<vmem>>, vector<1x2x128xf32>
    tpu.vector_store %arg4[%c0_16, %c0_17, %c0_18], %44 {strides = array<i32>} : memref<1x2x128xf32, #tpu.memory_space<vmem>>, vector<1x2x128xf32>,
    return
  }
  func.func @transform_0(%arg0: i32) -> (i32, i32, i32) {
    %c0_i32 = arith.constant 0 : i32
    %c0_i32_0 = arith.constant 0 : i32
    %c0_i32_1 = arith.constant 0 : i32
    return %c0_i32, %arg0, %c0_i32_0 : i32, i32, i32
  }
  func.func @transform_1(%arg0: i32) -> (i32, i32, i32) {
    %c0_i32 = arith.constant 0 : i32
    %c0_i32_0 = arith.constant 0 : i32
    %c0_i32_1 = arith.constant 0 : i32
    %c0_i32_2 = arith.constant 0 : i32
    return %c0_i32, %c0_i32_0, %c0_i32_1 : i32, i32, i32
  }
  func.func @transform_2(%arg0: i32) -> (i32, i32) {
    %c0_i32 = arith.constant 0 : i32
    %c0_i32_0 = arith.constant 0 : i32
    return %arg0, %c0_i32 : i32, i32
  }
  func.func @transform_3(%arg0: i32) -> (i32, i32, i32) {
    %c0_i32 = arith.constant 0 : i32
    %c0_i32_0 = arith.constant 0 : i32
    %c0_i32_1 = arith.constant 0 : i32
    return %arg0, %c0_i32, %c0_i32_0 : i32, i32, i32
  }
}

</mosaic_0001>

<bundles_post_ra>
// kernel: _cnn_layer_forward.1
= control target key start
LH: loop header
LB: loop body
LE: loop exit
PB: predicated region body
PF: predicated region fallthrough
CT: control target
= control target key end

     0   :  { %vm106_vm0 = vcmask 261120   ;;  %vm854_vm1 = vcmask 1040384   ;;  %s1369_s1 = inlined_call_operand.vmem [shape: bf16[5,32,128], index: 1, kind: input, shape index: {}]   ;;  %s1370_s0 = inlined_call_operand.vmem [shape: bf16[20,8,32], index: 0, kind: input, shape index: {}]   ;;  %s1371_s2 = inlined_call_operand.vmem [shape: f32[8,128], index: 2, kind: output, shape index: {0}]   ;;  %s1372_s3 = inlined_call_operand.vmem [shape: f32[1,2,128], index: 3, kind: output, shape index: {1}]  }
   0x1   :  { %v1152_v0 = vld [vmem:[%s1369_s1 + $0x10] sm:$0xff]   ;;  %v1207_v1 = vld [vmem:[%s1369_s1 + $0x20] sm:$0xff]   ;;  %v1154_v2 = vld [vmem:[%s1369_s1 + $0x18] sm:$0xff]  }
   0x2   :  { %984 = vmatprep.subr.bf16.mxu1 %v1152_v0  ;;  %1024 = vmatprep.subr.bf16.mxu0 %v1207_v1  ;;  %v1216_v3 = vld [vmem:[%s1369_s1 + $0x28] sm:$0xff]   ;;  %v1222_v4 = vld [vmem:[%s1370_s0 + $0x4] sm:$0xf]  ;;  %v18_v8 = vld [vmem:[%s1370_s0 + $0x10] sm:$0xf] }
   0x3   :  { %985 = vmatpush3.bf16.msra.mxu1 %v1152_v0  ;;  %1025 = vmatpush3.bf16.msra.mxu0 %v1207_v1  ;;  %v16_v5 = vld [vmem:[%s1370_s0 + $0x8] sm:$0xf]  ;;  %v17_v7 = vld [vmem:[%s1370_s0 + $0xc] sm:$0xf]  ;;  %v19_v9 = vld [vmem:[%s1370_s0 + $0x14] sm:$0xf] }
   0x4   :  { %986 = vmatprep.subr.bf16.mxu1 %v1154_v2  ;;  %1026 = vmatprep.subr.bf16.mxu0 %v1216_v3  ;;  %v865_v6 = vcombine.low %v1222_v4, %v16_v5  ;;  %v866_v10 = vcombine.low %v17_v7, %v18_v8  ;;  %v884_v11 = vcombine.low %v16_v5, %v17_v7  ;;  %v1161_v12 = vld [vmem:[%s1369_s1] sm:$0xff]   ;;  %v1162_v14 = vld [vmem:[%s1369_s1 + $0x30] sm:$0xff]   ;;  %v20_v15 = vld [vmem:[%s1370_s0 + $0x18] sm:$0xf] }
   0x5   :  { %v1242_v13 = vcombine.low %v18_v8, %v19_v9  ;;  %v21_v16 = vld [vmem:[%s1370_s0 + $0x1c] sm:$0xf]  ;;  %v867_v17 = vcombine.low %v19_v9, %v20_v15  ;;  %v22_v19 = vld [vmem:[%s1370_s0 + $0x20] sm:$0xf]  ;;  %v23_v20 = vld [vmem:[%s1370_s0 + $0x24] sm:$0xf] }
   0x6   :  { %988 = vmatprep.mubr.msk.bf16.mxu1 %vm106_vm0, %v865_v6  ;;  %1028 = vmatprep.mubr.msk.bf16.mxu0 %vm106_vm0, %v884_v11  ;;  %v1255_v18 = vcombine.low %v20_v15, %v21_v16  ;;  %v1167_v21 = vld [vmem:[%s1369_s1 + $0x38] sm:$0xff]   ;;  %v24_v22 = vld [vmem:[%s1370_s0 + $0x28] sm:$0xf]  ;;  %v1171_v24 = vld [vmem:[%s1369_s1 + $0x40] sm:$0xff]   ;;  %v868_v25 = vcombine.low %v21_v16, %v22_v19  ;;  %v887_v26 = vcombine.low %v22_v19, %v23_v20 }
   0x7   :  { %987 = vmatpush3.bf16.msra.mxu1 %v1154_v2  ;;  %1027 = vmatpush3.bf16.msra.mxu0 %v1216_v3  ;;  %v1170_v23 = vld [vmem:[%s1369_s1 + $0x8] sm:$0xff]   ;;  %v869_v27 = vcombine.low %v23_v20, %v24_v22  ;;  %v26_v29 = vld [vmem:[%s1370_s0 + $0x30] sm:$0xf]  ;;  %v27_v30 = vld [vmem:[%s1370_s0 + $0x34] sm:$0xf] }
   0x8   :  { %1004 = vmatprep.subr.bf16.mxu1 %v1161_v12  ;;  %1044 = vmatprep.subr.bf16.mxu0 %v1162_v14  ;;  %v25_v28 = vld [vmem:[%s1370_s0 + $0x2c] sm:$0xf]  ;;  %v28_v31 = vld [vmem:[%s1370_s0 + $0x38] sm:$0xf]  ;;  %v29_v35 = vld [vmem:[%s1370_s0 + $0x3c] sm:$0xf]  ;;  %v889_v44 = vcombine.low %v26_v29, %v27_v30 }
   0x9   :  { %v870_v32 = vcombine.low %v25_v28, %v26_v29  ;;  %v871_v33 = vcombine.low %v27_v30, %v28_v31  ;;  %v1174_v34 = vld [vmem:[%s1369_s1 + $0x48] sm:$0xff]   ;;  %v30_v36 = vld [vmem:[%s1370_s0 + $0x40] sm:$0xf]  ;;  %v31_v40 = vld [vmem:[%s1370_s0 + $0x44] sm:$0xf]  ;;  %v888_v43 = vcombine.low %v24_v22, %v25_v28  ;;  %v890_v45 = vcombine.low %v28_v31, %v29_v35 }
   0xa   :  { %989 = vmatmul.mubr.msk.bf16.vlgmr.msra.gmra.mrb[0].mxu1 %vm106_vm0, %v866_v10  ;;  %1029 = vmatmul.mubr.msk.bf16.vlgmr.msra.gmra.mrb[0].mxu0 %vm106_vm0, %v1242_v13  ;;  %v14_v37 = vld [vmem:[%s1370_s0] sm:$0xf]  ;;  %v872_v38 = vcombine.low %v29_v35, %v30_v36  ;;  %v32_v41 = vld [vmem:[%s1370_s0 + $0x48] sm:$0xf]  ;;  %v901_v46 = vcombine.low %v30_v36, %v31_v40  ;;  %v33_v47 = vld [vmem:[%s1370_s0 + $0x4c] sm:$0xf] }
   0xb   :  { %1005 = vmatpush3.bf16.msra.mxu1 %v1161_v12  ;;  %1045 = vmatpush3.bf16.msra.mxu0 %v1162_v14  ;;  %v883_v39 = vcombine.low %v14_v37, %v1222_v4  ;;  %v912_v42 = vcombine.low %v31_v40, %v32_v41  ;;  %v923_v48 = vcombine.low %v32_v41, %v33_v47 }
   0xc   :  { %992 = vmatprep.mubr.msk.bf16.mxu1 %vm106_vm0, %v867_v17  ;;  %1032 = vmatprep.mubr.msk.bf16.mxu0 %vm106_vm0, %v1255_v18 }
   0xd   :  { %1046 = vmatprep.subr.bf16.mxu0 %v1167_v21  ;;  %1006 = vmatprep.subr.bf16.mxu1 %v1170_v23 }
   0xf   :  { %1007 = vmatpush3.bf16.msra.mxu1 %v1170_v23  ;;  %1047 = vmatpush3.bf16.msra.mxu0 %v1167_v21 }
  0x10   :  { %1084 = vmatprep.subr.bf16.mxu1 %v1207_v1  ;;  %1064 = vmatprep.subr.bf16.mxu0 %v1171_v24 }
  0x12   :  { %993 = vmatmul.mubr.msk.bf16.gmra.mrb[4].mxu1 %vm106_vm0, %v868_v25  ;;  %1033 = vmatmul.mubr.msk.bf16.gmra.mrb[4].mxu0 %vm106_vm0, %v887_v26 }
  0x13   :  { %996 = vmatprep.mubr.msk.bf16.mxu1 %vm106_vm0, %v869_v27  ;;  %1048 = vmatprep.mubr.msk.bf16.mxu0 %vm106_vm0, %v866_v10 }
  0x1a   :  { %997 = vmatmul.mubr.msk.bf16.gmra.mrb[8].mxu1 %vm106_vm0, %v870_v32  ;;  %1049 = vmatmul.mubr.msk.bf16.vlgmr.msra.gmra.mrb[0].mxu0 %vm106_vm0, %v867_v17 }
  0x1b   :  { %1000 = vmatprep.mubr.msk.bf16.mxu1 %vm106_vm0, %v871_v33  ;;  %1065 = vmatpush3.bf16.msra.mxu0 %v1171_v24 }
  0x1c   :  { %1052 = vmatprep.mubr.msk.bf16.mxu0 %vm106_vm0, %v868_v25  ;;  %1066 = vmatprep.subr.bf16.mxu0 %v1174_v34 }
  0x1f   :  { %1067 = vmatpush3.bf16.msra.mxu0 %v1174_v34 }
  0x22   :  { %1001 = vmatmul.mubr.msk.bf16.gmra.mrb[12].mxu1 %vm106_vm0, %v872_v38  ;;  %1053 = vmatmul.mubr.msk.bf16.gmra.mrb[4].mxu0 %vm106_vm0, %v869_v27 }
  0x23   :  { %1008 = vmatprep.mubr.msk.bf16.mxu1 %vm106_vm0, %v883_v39  ;;  %1056 = vmatprep.mubr.msk.bf16.mxu0 %vm106_vm0, %v870_v32 }
  0x2a   :  { %1009 = vmatmul.mubr.msk.bf16.vlgmr.msra.gmra.mrb[0].mxu1 %vm106_vm0, %v884_v11  ;;  %1057 = vmatmul.mubr.msk.bf16.gmra.mrb[8].mxu0 %vm106_vm0, %v871_v33 }
  0x2b   :  { %1086 = vmatpush3.bf16.msra.mxu1 %v1207_v1  ;;  %1012 = vmatprep.mubr.msk.bf16.mxu1 %vm106_vm0, %v1242_v13 }
  0x2c   :  { %1060 = vmatprep.mubr.msk.bf16.mxu0 %vm106_vm0, %v872_v38  ;;  %1085 = vmatprep.subr.bf16.mxu1 %v1216_v3 }
  0x2f   :  { %1087 = vmatpush3.bf16.msra.mxu1 %v1216_v3 }
  0x32   :  { %1013 = vmatmul.mubr.msk.bf16.gmra.mrb[4].mxu1 %vm106_vm0, %v1255_v18  ;;  %1061 = vmatmul.mubr.msk.bf16.gmra.mrb[12].mxu0 %vm106_vm0, %v912_v42 }
  0x33   :  { %1016 = vmatprep.mubr.msk.bf16.mxu1 %vm106_vm0, %v887_v26  ;;  %1068 = vmatprep.mubr.msk.bf16.mxu0 %vm106_vm0, %v1242_v13 }
  0x3a   :  { %1017 = vmatmul.mubr.msk.bf16.gmra.mrb[8].mxu1 %vm106_vm0, %v888_v43  ;;  %1069 = vmatmul.mubr.msk.bf16.vlgmr.msra.gmra.mrb[0].mxu0 %vm106_vm0, %v1255_v18 }
  0x3b   :  { %1020 = vmatprep.mubr.msk.bf16.mxu1 %vm106_vm0, %v889_v44  ;;  %1072 = vmatprep.mubr.msk.bf16.mxu0 %vm106_vm0, %v887_v26 }
  0x42   :  { %1021 = vmatmul.mubr.msk.bf16.gmra.mrb[12].mxu1 %vm106_vm0, %v890_v45  ;;  %1073 = vmatmul.mubr.msk.bf16.gmra.mrb[4].mxu0 %vm106_vm0, %v888_v43 }
  0x43   :  { %1036 = vmatprep.mubr.msk.bf16.mxu1 %vm106_vm0, %v888_v43  ;;  %1076 = vmatprep.mubr.msk.bf16.mxu0 %vm106_vm0, %v889_v44 }
  0x4a   :  { %1037 = vmatmul.mubr.msk.bf16.vlgmr.msra.gmra.mrb[8].mxu1 %vm106_vm0, %v889_v44  ;;  %1077 = vmatmul.mubr.msk.bf16.gmra.mrb[8].mxu0 %vm106_vm0, %v890_v45 }
  0x4b   :  { %1040 = vmatprep.mubr.msk.bf16.mxu1 %vm106_vm0, %v890_v45  ;;  %1080 = vmatprep.mubr.msk.bf16.mxu0 %vm106_vm0, %v901_v46 }
  0x52   :  { %1041 = vmatmul.mubr.msk.bf16.gmra.mrb[12].mxu1 %vm106_vm0, %v901_v46  ;;  %1081 = vmatmul.mubr.msk.bf16.gmra.mrb[12].mxu0 %vm106_vm0, %v923_v48 }
  0xfd   :  { %v1010_v49 = vpop.f32.mrb[0].mxu1 }
  0xfe   :  { %v308_v50 = vpop.f32.mrb[1].mxu1 }
  0xff   :  { %v1011_v51 = vpop.f32.mrb[2].mxu1 }
 0x100   :  { %v311_v52 = vpop.f32.mrb[3].mxu1 }
 0x105   :  { %v1014_v53 = vpop.f32.mrb[4].mxu1 }
 0x106   :  { %v324_v54 = vpop.f32.mrb[5].mxu1 }
 0x107   :  { %v1015_v55 = vpop.f32.mrb[6].mxu1 }
 0x108   :  { %v327_v56 = vpop.f32.mrb[7].mxu1 }
 0x10d   :  { %v1070_v57 = vpop.f32.mrb[0].mxu0 }
 0x10e   :  { %v1088_v58 = vadd.f32 %v1070_v57, %v1010_v49  ;;  %v685_v59 = vpop.f32.mrb[1].mxu0 }
 0x10f   :  { %v1089_v60 = vadd.f32 %v685_v59, %v308_v50  ;;  %v1071_v61 = vpop.f32.mrb[2].mxu0 }
 0x110   :  { %v1090_v62 = vadd.f32 %v1071_v61, %v1011_v51  ;;  %v688_v63 = vpop.f32.mrb[3].mxu0  ;;  %v766_v2 = vmax.f32 %v1088_v58, 0.0 }
 0x111   :  { %v764_v0 = vmax.f32 %v1089_v60, 0.0  ;;  %v1091_v1 = vadd.f32 %v688_v63, %v311_v52 }
 0x112   :  { %v767_v4 = vmax.f32 %v1090_v62, 0.0  ;;  %v819_v11 = vmul.f32 %v766_v2, %v766_v2 }
 0x113   :  { %v1357_v3 = vmax.f32 %v1091_v1, 0.0  ;;  %v817_v5 = vmul.f32 %v764_v0, %v764_v0 }
 0x114   :  { %v820_v16 = vmul.f32 %v767_v4, %v767_v4 }
 0x115   :  { %v796_v6 = vadd.f32 %v1357_v3, %v764_v0  ;;  %v818_v7 = vmul.f32 %v1357_v3, %v1357_v3  ;;  %v1074_v8 = vpop.f32.mrb[4].mxu0 }
 0x116   :  { %v1092_v9 = vadd.f32 %v1074_v8, %v1014_v53  ;;  %v701_v10 = vpop.f32.mrb[5].mxu0 }
 0x117   :  { %v797_v12 = vadd.f32 %v796_v6, %v766_v2  ;;  %v833_v13 = vadd.f32 %v818_v7, %v817_v5  ;;  %v1093_v14 = vadd.f32 %v701_v10, %v324_v54  ;;  %v1075_v15 = vpop.f32.mrb[6].mxu0 }
 0x118   :  { %v770_v17 = vmax.f32 %v1092_v9, 0.0  ;;  %v1094_v18 = vadd.f32 %v1075_v15, %v1015_v55  ;;  %v704_v19 = vpop.f32.mrb[7].mxu0 }
 0x119   :  { %v834_v20 = vadd.f32 %v833_v13, %v819_v11  ;;  %v768_v21 = vmax.f32 %v1093_v14, 0.0  ;;  %v798_v22 = vadd.f32 %v797_v12, %v767_v4  ;;  %v1095_v23 = vadd.f32 %v704_v19, %v327_v56 }
 0x11a   :  { %v782_v24 = vmax.f32 %v766_v2, %v770_v17  ;;  %v771_v25 = vmax.f32 %v1094_v18, 0.0  ;;  %v823_v42 = vmul.f32 %v770_v17, %v770_v17 }
 0x11b   :  { %v780_v26 = vmax.f32 %v764_v0, %v768_v21  ;;  %v799_v27 = vadd.f32 %v798_v22, %v768_v21  ;;  %v821_v28 = vmul.f32 %v768_v21, %v768_v21  ;;  %v835_v29 = vadd.f32 %v834_v20, %v820_v16 }
 0x11c   :  { %v783_v30 = vmax.f32 %v767_v4, %v771_v25  ;;  %v769_v31 = vmax.f32 %v1095_v23, 0.0  ;;  %v824_v53 = vmul.f32 %v771_v25, %v771_v25 }
 0x11d   :  { %v1038_v32 = vpop.f32.mrb[8].mxu1  ;;  %v836_v33 = vadd.f32 %v835_v29, %v821_v28  ;;  %v1078_v34 = vpop.f32.mrb[8].mxu0 }
 0x11e   :  { %v455_v35 = vpop.f32.mrb[9].mxu1  ;;  %v781_v36 = vmax.f32 %v1357_v3, %v769_v31  ;;  %v800_v37 = vadd.f32 %v799_v27, %v769_v31  ;;  %v822_v38 = vmul.f32 %v769_v31, %v769_v31  ;;  %v1096_v39 = vadd.f32 %v1078_v34, %v1038_v32  ;;  %v717_v40 = vpop.f32.mrb[9].mxu0 }
 0x11f   :  { %v1039_v41 = vpop.f32.mrb[10].mxu1  ;;  %v1097_v43 = vadd.f32 %v717_v40, %v455_v35  ;;  %v1079_v44 = vpop.f32.mrb[10].mxu0 }
 0x120   :  { %v458_v45 = vpop.f32.mrb[11].mxu1  ;;  %v801_v46 = vadd.f32 %v800_v37, %v770_v17  ;;  %v837_v47 = vadd.f32 %v836_v33, %v822_v38  ;;  %v774_v48 = vmax.f32 %v1096_v39, 0.0  ;;  %v1098_v49 = vadd.f32 %v1079_v44, %v1039_v41  ;;  %v720_v50 = vpop.f32.mrb[11].mxu0 }
 0x121   :  { %v772_v51 = vmax.f32 %v1097_v43, 0.0  ;;  %v1099_v52 = vadd.f32 %v720_v50, %v458_v45 }
 0x122   :  { %v838_v54 = vadd.f32 %v837_v47, %v823_v42  ;;  %v786_v55 = vmax.f32 %v782_v24, %v774_v48  ;;  %v802_v56 = vadd.f32 %v801_v46, %v771_v25  ;;  %v775_v59 = vmax.f32 %v1098_v49, 0.0 }
 0x123   :  { %v784_v57 = vmax.f32 %v780_v26, %v772_v51  ;;  %v825_v58 = vmul.f32 %v772_v51, %v772_v51  ;;  %v773_v60 = vmax.f32 %v1099_v52, 0.0  ;;  %v827_v10 = vmul.f32 %v774_v48, %v774_v48 }
 0x124   :  { %v803_v61 = vadd.f32 %v802_v56, %v772_v51  ;;  %v839_v62 = vadd.f32 %v838_v54, %v824_v53  ;;  %v787_v0 = vmax.f32 %v783_v30, %v775_v59  ;;  %v828_v21 = vmul.f32 %v775_v59, %v775_v59 }
 0x125   :  { %v1042_v63 = vpop.f32.mrb[12].mxu1  ;;  %v785_v1 = vmax.f32 %v781_v36, %v773_v60  ;;  %v826_v2 = vmul.f32 %v773_v60, %v773_v60  ;;  %v1082_v3 = vpop.f32.mrb[12].mxu0 }
 0x126   :  { %v471_v4 = vpop.f32.mrb[13].mxu1  ;;  %v840_v5 = vadd.f32 %v839_v62, %v825_v58  ;;  %v804_v6 = vadd.f32 %v803_v61, %v773_v60  ;;  %v1100_v7 = vadd.f32 %v1082_v3, %v1042_v63  ;;  %v733_v8 = vpop.f32.mrb[13].mxu0 }
 0x127   :  { %v1043_v9 = vpop.f32.mrb[14].mxu1  ;;  %v1101_v11 = vadd.f32 %v733_v8, %v471_v4  ;;  %v1083_v12 = vpop.f32.mrb[14].mxu0 }
 0x128   :  { %v474_v13 = vpop.f32.mrb[15].mxu1  ;;  %v805_v14 = vadd.f32 %v804_v6, %v774_v48  ;;  %v841_v15 = vadd.f32 %v840_v5, %v826_v2  ;;  %v778_v16 = vmax.f32 %v1100_v7, 0.0  ;;  %v1102_v17 = vadd.f32 %v1083_v12, %v1043_v9  ;;  %v736_v18 = vpop.f32.mrb[15].mxu0 }
 0x129   :  { %v776_v19 = vmax.f32 %v1101_v11, 0.0  ;;  %v1103_v20 = vadd.f32 %v736_v18, %v474_v13 }
 0x12a   :  { %v842_v22 = vadd.f32 %v841_v15, %v827_v10  ;;  %v790_v23 = vmax.f32 %v786_v55, %v778_v16  ;;  %v806_v24 = vadd.f32 %v805_v14, %v775_v59  ;;  %v779_v27 = vmax.f32 %v1102_v17, 0.0 }
 0x12b   :  { %v788_v25 = vmax.f32 %v784_v57, %v776_v19  ;;  %v829_v26 = vmul.f32 %v776_v19, %v776_v19  ;;  %v777_v28 = vmax.f32 %v1103_v20, 0.0  ;;  %v831_v38 = vmul.f32 %v778_v16, %v778_v16 }
 0x12c   :  { %v807_v29 = vadd.f32 %v806_v24, %v776_v19  ;;  %v843_v30 = vadd.f32 %v842_v22, %v828_v21  ;;  %v791_v31 = vmax.f32 %v787_v0, %v779_v27  ;;  %v832_v42 = vmul.f32 %v779_v27, %v779_v27 }
 0x12d   :  { %v789_v32 = vmax.f32 %v785_v1, %v777_v28  ;;  %v830_v33 = vmul.f32 %v777_v28, %v777_v28 }
 0x12e   :  { %v844_v34 = vadd.f32 %v843_v30, %v829_v26  ;;  %v808_v35 = vadd.f32 %v807_v29, %v777_v28  ;;  %v793_v36 = vmax.f32 %v790_v23, %v791_v31 }
 0x12f   :  { %v792_v37 = vmax.f32 %v788_v25, %v789_v32 }
 0x130   :  { %v809_v39 = vadd.f32 %v808_v35, %v778_v16  ;;  %v845_v40 = vadd.f32 %v844_v34, %v830_v33 }
 0x131   :  { %v794_v41 = vmax.f32 %v792_v37, %v793_v36 }
 0x132   :  { %v810_v43 = vadd.f32 %v809_v39, %v779_v27  ;;  %v846_v44 = vadd.f32 %v845_v40, %v831_v38 }
 0x133   :  { %795 = vst [vmem:[%s1371_s2] sm:$0xff] %v794_v41 }
 0x134   :  { %v811_v45 = vrot.slane %v810_v43, 4  ;;  %v847_v46 = vadd.f32 %v846_v44, %v832_v42 }
 0x136   :  { %v812_v47 = vadd.f32 %v811_v45, %v810_v43  ;;  %v848_v48 = vrot.slane %v847_v46, 4 }
 0x138   :  { %v813_v49 = vrot.slane %v812_v47, 2  ;;  %v849_v50 = vadd.f32 %v848_v48, %v847_v46 }
 0x13a   :  { %v814_v51 = vadd.f32 %v813_v49, %v812_v47  ;;  %v850_v52 = vrot.slane %v849_v50, 2 }
 0x13c   :  { %v815_v53 = vrot.slane %v814_v51, 1  ;;  %v851_v54 = vadd.f32 %v850_v52, %v849_v50 }
 0x13e   :  { %v852_v55 = vrot.slane %v851_v54, 1  ;;  %v816_v56 = vadd.f32 %v815_v53, %v814_v51 }
 0x140   :  { %v853_v57 = vadd.f32 %v852_v55, %v851_v54 }
 0x142   :  { %v855_v58 = vsel %vm854_vm1, %v816_v56, %v853_v57 }
 0x143   :  { %856 = vst [vmem:[%s1372_s3] sm:$0x3] %v855_v58 }

</bundles_post_ra>
